<compile_context>
chip_gen: v7x
topology: tpu7x:2x2x1
jax: 0.10.0
libtpu: 0.0.40
codegen_flags: <defaults>
</compile_context>

<pallas_src>
import jax
import jax.numpy as jnp
from jax.experimental import pallas as pl
from jax.experimental.pallas import tpu as pltpu


def _make_mlp_kernel(hidden):
    def mlp_kernel(p_ref, x_ref, o_ref):
        # p_ref: (3*hidden + 1,) f32 in SMEM = [w1(0..H-1) | b1 | w2 | b2]
        # x_ref: (tile_r, 128)   f32 in VMEM, batch laid out as (rows, lanes)
        # o_ref: (tile_r, 128)   f32 in VMEM
        x = x_ref[...]
        acc = jnp.zeros_like(x)
        # Statically unrolled loop over the hidden units; SMEM scalars broadcast
        # for free on the VPU (no (H, TB) intermediate, no sublane reduction).
        for j in range(hidden):
            w1j = p_ref[j]
            b1j = p_ref[hidden + j]
            w2j = p_ref[2 * hidden + j]
            acc = acc + w2j * jnp.maximum(w1j * x + b1j, 0.0)
        o_ref[...] = acc + p_ref[3 * hidden]

    return mlp_kernel


def my_neural_network(x, w1, b1, w2, b2, *, tile_rows=512):
    """x: (B, 1); w1: (1, H); b1: (1, H); w2: (H, 1); b2: (1, 1) -> (B, 1) f32."""
    B = x.shape[0]
    H = w1.shape[1]
    LANES = 128

    # Explicit cast at the boundary; (B,1)->(B,) is a free reshape.
    x_flat = x.reshape(B).astype(jnp.float32)

    # Only pad when B is not a multiple of 128 (tail pad, single small copy).
    Bp = pl.cdiv(B, LANES) * LANES
    if Bp != B:
        x_flat = jnp.pad(x_flat, (0, Bp - B))
    rows = Bp // LANES
    x2d = x_flat.reshape(rows, LANES)  # contiguous reshape, no copy

    # Either tile_r == rows (full dim) or tile_r == tile_rows (multiple of 8).
    tile_r = min(tile_rows, rows)

    # All parameters as one flat f32[3H+1] SMEM array (pads to ~128 B of SMEM).
    params = jnp.concatenate(
        [
            w1.reshape(H).astype(jnp.float32),
            b1.reshape(H).astype(jnp.float32),
            w2.reshape(H).astype(jnp.float32),
            b2.reshape(1).astype(jnp.float32),
        ]
    )  # (3*H + 1,)

    out2d = pl.pallas_call(
        _make_mlp_kernel(H),
        out_shape=jax.ShapeDtypeStruct((rows, LANES), jnp.float32),
        grid=(pl.cdiv(rows, tile_r),),
        in_specs=[
            pl.BlockSpec(memory_space=pltpu.MemorySpace.SMEM),   # params (scalars)
            pl.BlockSpec((tile_r, LANES), lambda i: (i, 0)),     # x slab
        ],
        out_specs=pl.BlockSpec((tile_r, LANES), lambda i: (i, 0)),
        compiler_params=pltpu.CompilerParams(
            dimension_semantics=("parallel",),
        ),
    )(params, x2d)

    out_flat = out2d.reshape(Bp)       # free reshape
    if Bp != B:
        out_flat = out_flat[:B]        # only when the tail was padded
    return out_flat.reshape(B, 1)


def _reference(x, w1, b1, w2, b2):
    return jnp.maximum(x.astype(jnp.float32) @ w1 + b1, 0.0) @ w2 + b2


if __name__ == "__main__":
    key = jax.random.PRNGKey(0)
    k_x, k_w1, k_b1, k_w2, k_b2, k_x2 = jax.random.split(key, 6)

    batch, in_f, hid_f, out_f = 8, 1, 10, 1

    # PyTorch-style uniform(-1/sqrt(fan_in), 1/sqrt(fan_in)) init.
    bound1 = 1.0 / (in_f ** 0.5)
    bound2 = 1.0 / (hid_f ** 0.5)
    w1 = jax.random.uniform(k_w1, (in_f, hid_f), jnp.float32, -bound1, bound1)
    b1 = jax.random.uniform(k_b1, (1, hid_f), jnp.float32, -bound1, bound1)
    w2 = jax.random.uniform(k_w2, (hid_f, out_f), jnp.float32, -bound2, bound2)
    b2 = jax.random.uniform(k_b2, (1, out_f), jnp.float32, -bound2, bound2)

    # Case 1: tiny batch (ragged, pads to one 128-lane row).
    x_small = jax.random.normal(k_x, (batch, in_f), jnp.float32)
    out_small = jax.block_until_ready(my_neural_network(x_small, w1, b1, w2, b2))
    ref_small = _reference(x_small, w1, b1, w2, b2)
    assert out_small.shape == (batch, out_f)
    assert jnp.allclose(out_small, ref_small, atol=1e-5, rtol=1e-5)

    # Case 2: batch that is a multiple of 128 (no wrapper-side pad/slice at all).
    batch2 = 384
    x_big = jax.random.normal(k_x2, (batch2, in_f), jnp.float32)
    out_big = jax.block_until_ready(my_neural_network(x_big, w1, b1, w2, b2))
    ref_big = _reference(x_big, w1, b1, w2, b2)
    assert out_big.shape == (batch2, out_f)
    assert jnp.allclose(out_big, ref_big, atol=1e-5, rtol=1e-5)

    print("KERNEL_OK")
</pallas_src>

<mosaic_0001>
module attributes {stable_mosaic.version = 11 : i64} {
  func.func @mlp_kernel(%arg0: i32, %arg1: memref<31xf32, #tpu.memory_space<smem>>, %arg2: memref<1x128xf32, #tpu.memory_space<vmem>>, %arg3: memref<1x128xf32, #tpu.memory_space<vmem>>) attributes {dimension_semantics = [#tpu.dimension_semantics<parallel>], iteration_bounds = array<i64: 1>, scalar_prefetch = 0 : i64, scratch_operands = 0 : i64, tpu.core_type = #tpu.core_type<tc>, window_params = [{transform_indices = @transform_0, window_bounds = array<i64: 31>}, {transform_indices = @transform_1, window_bounds = array<i64: 1, 128>}, {transform_indices = @transform_2, window_bounds = array<i64: 1, 128>}]} {
    %c0 = arith.constant 0 : index
    %c0_0 = arith.constant 0 : index
    %0 = vector.load %arg2[%c0, %c0_0] : memref<1x128xf32, #tpu.memory_space<vmem>>, vector<1x128xf32>
    %cst = arith.constant 0.000000e+00 : f32
    %1 = vector.broadcast %cst : f32 to vector<1x128xf32>
    %c0_1 = arith.constant 0 : index
    %2 = memref.load %arg1[%c0_1] : memref<31xf32, #tpu.memory_space<smem>>
    %c10 = arith.constant 10 : index
    %3 = memref.load %arg1[%c10] : memref<31xf32, #tpu.memory_space<smem>>
    %c20 = arith.constant 20 : index
    %4 = memref.load %arg1[%c20] : memref<31xf32, #tpu.memory_space<smem>>
    %5 = vector.broadcast %2 : f32 to vector<1x128xf32>
    %6 = arith.mulf %5, %0 : vector<1x128xf32>
    %7 = vector.broadcast %3 : f32 to vector<1x128xf32>
    %8 = arith.addf %6, %7 : vector<1x128xf32>
    %cst_2 = arith.constant 0.000000e+00 : f32
    %9 = vector.broadcast %cst_2 : f32 to vector<1x128xf32>
    %10 = arith.maximumf %8, %9 : vector<1x128xf32>
    %11 = vector.broadcast %4 : f32 to vector<1x128xf32>
    %12 = arith.mulf %11, %10 : vector<1x128xf32>
    %13 = arith.addf %1, %12 : vector<1x128xf32>
    %c1 = arith.constant 1 : index
    %14 = memref.load %arg1[%c1] : memref<31xf32, #tpu.memory_space<smem>>
    %c11 = arith.constant 11 : index
    %15 = memref.load %arg1[%c11] : memref<31xf32, #tpu.memory_space<smem>>
    %c21 = arith.constant 21 : index
    %16 = memref.load %arg1[%c21] : memref<31xf32, #tpu.memory_space<smem>>
    %17 = vector.broadcast %14 : f32 to vector<1x128xf32>
    %18 = arith.mulf %17, %0 : vector<1x128xf32>
    %19 = vector.broadcast %15 : f32 to vector<1x128xf32>
    %20 = arith.addf %18, %19 : vector<1x128xf32>
    %cst_3 = arith.constant 0.000000e+00 : f32
    %21 = vector.broadcast %cst_3 : f32 to vector<1x128xf32>
    %22 = arith.maximumf %20, %21 : vector<1x128xf32>
    %23 = vector.broadcast %16 : f32 to vector<1x128xf32>
    %24 = arith.mulf %23, %22 : vector<1x128xf32>
    %25 = arith.addf %13, %24 : vector<1x128xf32>
    %c2 = arith.constant 2 : index
    %26 = memref.load %arg1[%c2] : memref<31xf32, #tpu.memory_space<smem>>
    %c12 = arith.constant 12 : index
    %27 = memref.load %arg1[%c12] : memref<31xf32, #tpu.memory_space<smem>>
    %c22 = arith.constant 22 : index
    %28 = memref.load %arg1[%c22] : memref<31xf32, #tpu.memory_space<smem>>
    %29 = vector.broadcast %26 : f32 to vector<1x128xf32>
    %30 = arith.mulf %29, %0 : vector<1x128xf32>
    %31 = vector.broadcast %27 : f32 to vector<1x128xf32>
    %32 = arith.addf %30, %31 : vector<1x128xf32>
    %cst_4 = arith.constant 0.000000e+00 : f32
    %33 = vector.broadcast %cst_4 : f32 to vector<1x128xf32>
    %34 = arith.maximumf %32, %33 : vector<1x128xf32>
    %35 = vector.broadcast %28 : f32 to vector<1x128xf32>
    %36 = arith.mulf %35, %34 : vector<1x128xf32>
    %37 = arith.addf %25, %36 : vector<1x128xf32>
    %c3 = arith.constant 3 : index
    %38 = memref.load %arg1[%c3] : memref<31xf32, #tpu.memory_space<smem>>
    %c13 = arith.constant 13 : index
    %39 = memref.load %arg1[%c13] : memref<31xf32, #tpu.memory_space<smem>>
    %c23 = arith.constant 23 : index
    %40 = memref.load %arg1[%c23] : memref<31xf32, #tpu.memory_space<smem>>
    %41 = vector.broadcast %38 : f32 to vector<1x128xf32>
    %42 = arith.mulf %41, %0 : vector<1x128xf32>
    %43 = vector.broadcast %39 : f32 to vector<1x128xf32>
    %44 = arith.addf %42, %43 : vector<1x128xf32>
    %cst_5 = arith.constant 0.000000e+00 : f32
    %45 = vector.broadcast %cst_5 : f32 to vector<1x128xf32>
    %46 = arith.maximumf %44, %45 : vector<1x128xf32>
    %47 = vector.broadcast %40 : f32 to vector<1x128xf32>
    %48 = arith.mulf %47, %46 : vector<1x128xf32>
    %49 = arith.addf %37, %48 : vector<1x128xf32>
    %c4 = arith.constant 4 : index
    %50 = memref.load %arg1[%c4] : memref<31xf32, #tpu.memory_space<smem>>
    %c14 = arith.constant 14 : index
    %51 = memref.load %arg1[%c14] : memref<31xf32, #tpu.memory_space<smem>>
    %c24 = arith.constant 24 : index
    %52 = memref.load %arg1[%c24] : memref<31xf32, #tpu.memory_space<smem>>
    %53 = vector.broadcast %50 : f32 to vector<1x128xf32>
    %54 = arith.mulf %53, %0 : vector<1x128xf32>
    %55 = vector.broadcast %51 : f32 to vector<1x128xf32>
    %56 = arith.addf %54, %55 : vector<1x128xf32>
    %cst_6 = arith.constant 0.000000e+00 : f32
    %57 = vector.broadcast %cst_6 : f32 to vector<1x128xf32>
    %58 = arith.maximumf %56, %57 : vector<1x128xf32>
    %59 = vector.broadcast %52 : f32 to vector<1x128xf32>
    %60 = arith.mulf %59, %58 : vector<1x128xf32>
    %61 = arith.addf %49, %60 : vector<1x128xf32>
    %c5 = arith.constant 5 : index
    %62 = memref.load %arg1[%c5] : memref<31xf32, #tpu.memory_space<smem>>
    %c15 = arith.constant 15 : index
    %63 = memref.load %arg1[%c15] : memref<31xf32, #tpu.memory_space<smem>>
    %c25 = arith.constant 25 : index
    %64 = memref.load %arg1[%c25] : memref<31xf32, #tpu.memory_space<smem>>
    %65 = vector.broadcast %62 : f32 to vector<1x128xf32>
    %66 = arith.mulf %65, %0 : vector<1x128xf32>
    %67 = vector.broadcast %63 : f32 to vector<1x128xf32>
    %68 = arith.addf %66, %67 : vector<1x128xf32>
    %cst_7 = arith.constant 0.000000e+00 : f32
    %69 = vector.broadcast %cst_7 : f32 to vector<1x128xf32>
    %70 = arith.maximumf %68, %69 : vector<1x128xf32>
    %71 = vector.broadcast %64 : f32 to vector<1x128xf32>
    %72 = arith.mulf %71, %70 : vector<1x128xf32>
    %73 = arith.addf %61, %72 : vector<1x128xf32>
    %c6 = arith.constant 6 : index
    %74 = memref.load %arg1[%c6] : memref<31xf32, #tpu.memory_space<smem>>
    %c16 = arith.constant 16 : index
    %75 = memref.load %arg1[%c16] : memref<31xf32, #tpu.memory_space<smem>>
    %c26 = arith.constant 26 : index
    %76 = memref.load %arg1[%c26] : memref<31xf32, #tpu.memory_space<smem>>
    %77 = vector.broadcast %74 : f32 to vector<1x128xf32>
    %78 = arith.mulf %77, %0 : vector<1x128xf32>
    %79 = vector.broadcast %75 : f32 to vector<1x128xf32>
    %80 = arith.addf %78, %79 : vector<1x128xf32>
    %cst_8 = arith.constant 0.000000e+00 : f32
    %81 = vector.broadcast %cst_8 : f32 to vector<1x128xf32>
    %82 = arith.maximumf %80, %81 : vector<1x128xf32>
    %83 = vector.broadcast %76 : f32 to vector<1x128xf32>
    %84 = arith.mulf %83, %82 : vector<1x128xf32>
    %85 = arith.addf %73, %84 : vector<1x128xf32>
    %c7 = arith.constant 7 : index
    %86 = memref.load %arg1[%c7] : memref<31xf32, #tpu.memory_space<smem>>
    %c17 = arith.constant 17 : index
    %87 = memref.load %arg1[%c17] : memref<31xf32, #tpu.memory_space<smem>>
    %c27 = arith.constant 27 : index
    %88 = memref.load %arg1[%c27] : memref<31xf32, #tpu.memory_space<smem>>
    %89 = vector.broadcast %86 : f32 to vector<1x128xf32>
    %90 = arith.mulf %89, %0 : vector<1x128xf32>
    %91 = vector.broadcast %87 : f32 to vector<1x128xf32>
    %92 = arith.addf %90, %91 : vector<1x128xf32>
    %cst_9 = arith.constant 0.000000e+00 : f32
    %93 = vector.broadcast %cst_9 : f32 to vector<1x128xf32>
    %94 = arith.maximumf %92, %93 : vector<1x128xf32>
    %95 = vector.broadcast %88 : f32 to vector<1x128xf32>
    %96 = arith.mulf %95, %94 : vector<1x128xf32>
    %97 = arith.addf %85, %96 : vector<1x128xf32>
    %c8 = arith.constant 8 : index
    %98 = memref.load %arg1[%c8] : memref<31xf32, #tpu.memory_space<smem>>
    %c18 = arith.constant 18 : index
    %99 = memref.load %arg1[%c18] : memref<31xf32, #tpu.memory_space<smem>>
    %c28 = arith.constant 28 : index
    %100 = memref.load %arg1[%c28] : memref<31xf32, #tpu.memory_space<smem>>
    %101 = vector.broadcast %98 : f32 to vector<1x128xf32>
    %102 = arith.mulf %101, %0 : vector<1x128xf32>
    %103 = vector.broadcast %99 : f32 to vector<1x128xf32>
    %104 = arith.addf %102, %103 : vector<1x128xf32>
    %cst_10 = arith.constant 0.000000e+00 : f32
    %105 = vector.broadcast %cst_10 : f32 to vector<1x128xf32>
    %106 = arith.maximumf %104, %105 : vector<1x128xf32>
    %107 = vector.broadcast %100 : f32 to vector<1x128xf32>
    %108 = arith.mulf %107, %106 : vector<1x128xf32>
    %109 = arith.addf %97, %108 : vector<1x128xf32>
    %c9 = arith.constant 9 : index
    %110 = memref.load %arg1[%c9] : memref<31xf32, #tpu.memory_space<smem>>
    %c19 = arith.constant 19 : index
    %111 = memref.load %arg1[%c19] : memref<31xf32, #tpu.memory_space<smem>>
    %c29 = arith.constant 29 : index
    %112 = memref.load %arg1[%c29] : memref<31xf32, #tpu.memory_space<smem>>
    %113 = vector.broadcast %110 : f32 to vector<1x128xf32>
    %114 = arith.mulf %113, %0 : vector<1x128xf32>
    %115 = vector.broadcast %111 : f32 to vector<1x128xf32>
    %116 = arith.addf %114, %115 : vector<1x128xf32>
    %cst_11 = arith.constant 0.000000e+00 : f32
    %117 = vector.broadcast %cst_11 : f32 to vector<1x128xf32>
    %118 = arith.maximumf %116, %117 : vector<1x128xf32>
    %119 = vector.broadcast %112 : f32 to vector<1x128xf32>
    %120 = arith.mulf %119, %118 : vector<1x128xf32>
    %121 = arith.addf %109, %120 : vector<1x128xf32>
    %c30 = arith.constant 30 : index
    %122 = memref.load %arg1[%c30] : memref<31xf32, #tpu.memory_space<smem>>
    %123 = vector.broadcast %122 : f32 to vector<1x128xf32>
    %124 = arith.addf %121, %123 : vector<1x128xf32>
    %c0_12 = arith.constant 0 : index
    %c0_13 = arith.constant 0 : index
    %125 = vector.load %arg3[%c0_12, %c0_13] : memref<1x128xf32, #tpu.memory_space<vmem>>, vector<1x128xf32>
    tpu.vector_store %arg3[%c0_12, %c0_13], %124 {strides = array<i32>} : memref<1x128xf32, #tpu.memory_space<vmem>>, vector<1x128xf32>,
    return
  }
  func.func @transform_0(%arg0: i32) -> i32 {
    %c0_i32 = arith.constant 0 : i32
    %c0_i32_0 = arith.constant 0 : i32
    return %c0_i32 : i32
  }
  func.func @transform_1(%arg0: i32) -> (i32, i32) {
    %c0_i32 = arith.constant 0 : i32
    %c0_i32_0 = arith.constant 0 : i32
    return %arg0, %c0_i32 : i32, i32
  }
  func.func @transform_2(%arg0: i32) -> (i32, i32) {
    %c0_i32 = arith.constant 0 : i32
    %c0_i32_0 = arith.constant 0 : i32
    return %arg0, %c0_i32 : i32, i32
  }
}

</mosaic_0001>

<bundles_post_ra>
// kernel: tpu_custom_call.1
= control target key start
LH: loop header
LB: loop body
LE: loop exit
PB: predicated region body
PF: predicated region fallthrough
CT: control target
= control target key end

     0   :  { %7 = vsyncpa [#allocation4], 0  ;;  %s349_s0 = inlined_call_operand.hbm [shape: f32[31], index: 0, kind: input, shape index: {}]   ;;  %s350_s1 = inlined_call_operand.vmem [shape: f32[1,128], index: 1, kind: input, shape index: {}]   ;;  %s351_s2 = inlined_call_operand.hbm [shape: f32[1,128], index: 2, kind: output, shape index: {}]  }
   0x1   :  { %8 = vsyncpa [#allocation3], 0  ;;  %s185_s11 = scalar_lea.hbm %s349_s0, 16 }
   0x2   :  { %p186_p0 = scmp.ne.s32.totalorder %s349_s0, %s185_s11  ;;  %p189_p1 = scmp.lt.u32.totalorder %s185_s11, %s349_s0 }
   0x4   :  { %p191_p2 = pnand %p189_p1, %p186_p0 }
   0x6   :  { %194 = shalt.err (!%p191_p2)
}
   0x7   :  { %s221_s16 = smov [#allocation2]  }
   0x8   :  { %16 = dma.hbm_to_smem %s349_s0, 16, %s221_s16, [#allocation4]  }
   0x9   :  { %217 = dma.done.wait [#allocation4], 16  }
   0xa   :  { %218 = vsyncadd [#allocation4], 4294967280 }
   0xb   :  { %22 = sfence }
   0xc   :  { %s24_s19 = sld [smem:[#allocation2]]  ;;  %s153_s20 = sld [smem:[#allocation2 + $0xa]]  ;;  %v259_v0 = vld [vmem:[%s350_s1] sm:$0x1] }
   0xd   :  { %s250_s21 = sld [smem:[#allocation2 + $0x14]]  ;;  %s155_s22 = sld [smem:[#allocation2 + $0x1]] }
   0xe   :  { %s156_s23 = sld [smem:[#allocation2 + $0xb]]  ;;  %s252_s24 = sld [smem:[#allocation2 + $0x15]] }
   0xf   :  { %s158_s25 = sld [smem:[#allocation2 + $0x2]]  ;;  %s254_s26 = sld [smem:[#allocation2 + $0xc]] }
  0x10   :  { %s261_s0 = sld [smem:[#allocation2 + $0x16]]  ;;  %s161_s29 = sld [smem:[#allocation2 + $0x3]] }
  0x11   :  { %s263_s30 = sld [smem:[#allocation2 + $0xd]]  ;;  %s265_s3 = sld [smem:[#allocation2 + $0x17]] }
  0x12   :  { %v27_v1 = vstv %s24_s19  ;;  %v29_v2 = vstv %s153_s20  ;;  %s267_s4 = sld [smem:[#allocation2 + $0x4]]  ;;  %s269_s5 = sld [smem:[#allocation2 + $0xe]] }
  0x13   :  { %v28_v3 = vmul.f32 %v27_v1, %v259_v0  ;;  %v38_v4 = vstv %s155_s22  ;;  %s272_s1 = sld [smem:[#allocation2 + $0x18]]  ;;  %s274_s6 = sld [smem:[#allocation2 + $0x5]]  ;;  %v32_v8 = vstv %s250_s21 }
  0x14   :  { %v39_v5 = vmul.f32 %v38_v4, %v259_v0  ;;  %v40_v6 = vstv %s156_s23  ;;  %s277_s7 = sld [smem:[#allocation2 + $0xf]]  ;;  %s281_s8 = sld [smem:[#allocation2 + $0x6]]  ;;  %v43_v12 = vstv %s252_s24 }
  0x15   :  { %v30_v7 = vadd.f32 %v29_v2, %v28_v3  ;;  %v49_v9 = vstv %s158_s25  ;;  %v51_v10 = vstv %s254_s26  ;;  %s283_s9 = sld [smem:[#allocation2 + $0x10]]  ;;  %s287_s10 = sld [smem:[#allocation2 + $0x19]] }
  0x16   :  { %v41_v11 = vadd.f32 %v40_v6, %v39_v5  ;;  %v50_v13 = vmul.f32 %v49_v9, %v259_v0  ;;  %v60_v14 = vstv %s161_s29  ;;  %s289_s11 = sld [smem:[#allocation2 + $0x7]]  ;;  %v54_v16 = vstv %s261_s0  ;;  %s294_s12 = sld [smem:[#allocation2 + $0x1a]] }
  0x17   :  { %v31_v15 = vmax.f32 %v30_v7, 0.0  ;;  %v61_v17 = vmul.f32 %v60_v14, %v259_v0  ;;  %v62_v18 = vstv %s263_s30  ;;  %s296_s13 = sld [smem:[#allocation2 + $0x11]]  ;;  %s300_s14 = sld [smem:[#allocation2 + $0x8]]  ;;  %v65_v25 = vstv %s265_s3 }
  0x18   :  { %v42_v19 = vmax.f32 %v41_v11, 0.0  ;;  %v52_v20 = vadd.f32 %v51_v10, %v50_v13  ;;  %v71_v21 = vstv %s267_s4  ;;  %v73_v22 = vstv %s269_s5  ;;  %s302_s15 = sld [smem:[#allocation2 + $0x12]]  ;;  %s306_s16 = sld [smem:[#allocation2 + $0x1b]] }
  0x19   :  { %v33_v23 = vmul.f32 %v32_v8, %v31_v15  ;;  %v63_v24 = vadd.f32 %v62_v18, %v61_v17  ;;  %v72_v26 = vmul.f32 %v71_v21, %v259_v0  ;;  %v82_v29 = vstv %s274_s6  ;;  %s310_s17 = sld [smem:[#allocation2 + $0x9]]  ;;  %s312_s18 = sld [smem:[#allocation2 + $0x13]] }
  0x1a   :  { %v44_v27 = vmul.f32 %v43_v12, %v42_v19  ;;  %v53_v28 = vmax.f32 %v52_v20, 0.0  ;;  %v84_v30 = vstv %s277_s7  ;;  %v76_v33 = vstv %s272_s1  ;;  %s318_s19 = sld [smem:[#allocation2 + $0x1c]]  ;;  %s324_s20 = sld [smem:[#allocation2 + $0x1d]] }
  0x1b   :  { %v64_v31 = vmax.f32 %v63_v24, 0.0  ;;  %v74_v32 = vadd.f32 %v73_v22, %v72_v26  ;;  %v83_v34 = vmul.f32 %v82_v29, %v259_v0  ;;  %v93_v37 = vstv %s281_s8  ;;  %s182_s21 = sld [smem:[#allocation2 + $0x1e]]  ;;  %s222_s22 = smov [#allocation5]  }
  0x1c   :  { %v45_v35 = vadd.f32 %v44_v27, %v33_v23  ;;  %v55_v36 = vmul.f32 %v54_v16, %v53_v28  ;;  %v95_v38 = vstv %s283_s9  ;;  %v94_v42 = vmul.f32 %v93_v37, %v259_v0  ;;  %s144_s23 = sshll.u32 %s222_s22, 4  ;;  %s145_s23 = int_to_ptr.vmem [resolvable:$true] %s144_s23 }
  0x1d   :  { %v66_v39 = vmul.f32 %v65_v25, %v64_v31  ;;  %v75_v40 = vmax.f32 %v74_v32, 0.0  ;;  %v85_v41 = vadd.f32 %v84_v30, %v83_v34  ;;  %v87_v44 = vstv %s287_s10  ;;  %s195_s24 = scalar_lea.vmem %s145_s23, 16  ;;  %s199_s25 = scalar_lea.vmem %s145_s23, 32 }
  0x1e   :  { %v56_v43 = vadd.f32 %v55_v36, %v45_v35  ;;  %v104_v45 = vstv %s289_s11  ;;  %v106_v46 = vstv %s296_s13  ;;  %v96_v49 = vadd.f32 %v95_v38, %v94_v42  ;;  %p196_p3 = scmp.ne.s32.totalorder %s145_s23, %s195_s24  ;;  %p200_p4 = scmp.lt.s32.totalorder %s145_s23, %s145_s23 }
  0x1f   :  { %v77_v47 = vmul.f32 %v76_v33, %v75_v40  ;;  %v86_v48 = vmax.f32 %v85_v41, 0.0  ;;  %v105_v50 = vmul.f32 %v104_v45, %v259_v0  ;;  %v98_v52 = vstv %s294_s12  ;;  %p201_p5 = scmp.lt.s32.totalorder %s199_s25, %s195_s24 }
  0x20   :  { %v67_v51 = vadd.f32 %v66_v39, %v56_v43  ;;  %v115_v53 = vstv %s300_s14  ;;  %v117_v54 = vstv %s302_s15  ;;  %v97_v56 = vmax.f32 %v96_v49, 0.0 }
  0x21   :  { %v88_v55 = vmul.f32 %v87_v44, %v86_v48  ;;  %v107_v57 = vadd.f32 %v106_v46, %v105_v50  ;;  %v116_v58 = vmul.f32 %v115_v53, %v259_v0  ;;  %v109_v60 = vstv %s306_s16  ;;  %p202_p6 = por %p201_p5, %p200_p4 }
  0x22   :  { %v78_v59 = vadd.f32 %v77_v47, %v67_v51  ;;  %v126_v61 = vstv %s310_s17  ;;  %v128_v62 = vstv %s312_s18  ;;  %v99_v63 = vmul.f32 %v98_v52, %v97_v56 }
  0x23   :  { %v108_v1 = vmax.f32 %v107_v57, 0.0  ;;  %v118_v2 = vadd.f32 %v117_v54, %v116_v58  ;;  %v127_v3 = vmul.f32 %v126_v61, %v259_v0  ;;  %v120_v5 = vstv %s318_s19  ;;  %p203_p7 = pnand %p202_p6, %p196_p3 }
  0x24   :  { %v89_v4 = vadd.f32 %v88_v55, %v78_v59  ;;  %v131_v10 = vstv %s324_s20  ;;  %v135_v16 = vstv %s182_s21 }
  0x25   :  { %v110_v6 = vmul.f32 %v109_v60, %v108_v1  ;;  %v119_v7 = vmax.f32 %v118_v2, 0.0  ;;  %v129_v8 = vadd.f32 %v128_v62, %v127_v3 }
  0x26   :  { %v100_v9 = vadd.f32 %v99_v63, %v89_v4 }
  0x27   :  { %v121_v11 = vmul.f32 %v120_v5, %v119_v7  ;;  %v130_v12 = vmax.f32 %v129_v8, 0.0 }
  0x28   :  { %v111_v13 = vadd.f32 %v110_v6, %v100_v9 }
  0x29   :  { %v132_v14 = vmul.f32 %v131_v10, %v130_v12 }
  0x2a   :  { %v122_v15 = vadd.f32 %v121_v11, %v111_v13 }
  0x2c   :  { %v133_v17 = vadd.f32 %v132_v14, %v122_v15 }
  0x2e   :  { %v136_v18 = vadd.f32 %v135_v16, %v133_v17 }
  0x30   :  { %137 = vst [vmem:[#allocation5] sm:$0x1] %v136_v18 }
  0x31   :  { %206 = shalt.err (!%p203_p7)
}
  0x32   :  { %s207_s28 = scalar_lea.hbm %s351_s2, 16 }
  0x33   :  { %p208_p8 = scmp.ne.s32.totalorder %s351_s2, %s207_s28  ;;  %p211_p9 = scmp.lt.u32.totalorder %s207_s28, %s351_s2 }
  0x35   :  { %p213_p10 = pnand %p211_p9, %p208_p8 }
  0x37   :  { %216 = shalt.err (!%p213_p10)
}
  0x38   :  { %147 = dma.vmem_to_hbm [thread:$0]  %s145_s23, 16, %s351_s2, [#allocation3]  }
  0x39   :  { %219 = dma.done.wait [#allocation3], 16  }
  0x3a   :  { %220 = vsyncadd [#allocation3], 4294967280 }
  0x3b   :  { %151 = vsyncpa [#allocation3], 1 }
  0x3c   :  { %152 = vsyncpa [#allocation4], 1 }

</bundles_post_ra>
